<compile_context>
chip_gen: v5e
topology: v5e:2x2
jax: 0.10.0
libtpu: 0.0.40
codegen_flags: <defaults>
</compile_context>

<pallas_src>
import functools

import jax
import jax.numpy as jnp
from jax.experimental import pallas as pl
from jax.experimental.pallas import tpu as pltpu

_ACT_DTYPE = jnp.bfloat16          # activation / matmul-operand dtype
_VMEM_LIMIT = 32 * 1024 * 1024     # conservative: leaves headroom on v7x (64 MiB)


def _round_up(x, m):
    return (x + m - 1) // m * m


def _pick_tile(dim, cap, mult, align=False):
    """Tile size for `dim`: full dim when it fits under `cap` (optionally
    rounded up to `mult`), otherwise the multiple of `mult` <= cap that
    minimizes padding (ties -> largest)."""
    if dim <= cap:
        return _round_up(dim, mult) if align else dim
    best, best_waste = mult, (-dim) % mult
    c = 2 * mult
    while c <= cap:
        waste = (-dim) % c
        if waste < best_waste or (waste == best_waste and c > best):
            best, best_waste = c, waste
        c += mult
    return best


# --------------------------------------------------------------------------
# Fused Pallas matmul (single K block, weight-stationary) + bias [+ ReLU]
# BN scale is folded into the weights at prep time, so the epilogue is just
# `+ bias` (+ ReLU); no accumulator scratch / K grid axis is needed.
# --------------------------------------------------------------------------
def _mm_bias_kernel(a_ref, b_ref, c_ref, o_ref, *, relu):
    y = jnp.dot(a_ref[...], b_ref[...],
                preferred_element_type=jnp.float32) + c_ref[...]
    if relu:
        y = jnp.maximum(y, 0.0)
    o_ref[...] = y.astype(o_ref.dtype)


def matmul_bias_act(a, b, bias, relu=True, out_dtype=_ACT_DTYPE,
                    tm_cap=512, tn_cap=512):
    """(M,K)@(K,N) + bias, f32 accumulation.  N is padded to a 128 multiple
    (lane-dense stores); returns (M, round_up(N,128)) — caller slices N."""
    M, K = a.shape
    K2, N = b.shape
    assert K == K2
    Np = _round_up(N, 128)
    if Np != N:                       # weights are normally pre-padded
        b = jnp.pad(b, ((0, 0), (0, Np - N)))
        bias = jnp.pad(bias, (0, Np - N))

    tn = _pick_tile(Np, tn_cap, 128)
    tm = _pick_tile(M, tm_cap, 16, align=True)
    # Expose >= 2 parallel grid blocks when possible (both v7x TensorCores).
    if (Np // tn) * (_round_up(M, tm) // tm) < 2 and M > 16:
        tm = _round_up(-(-M // 2), 16)
    Mp = _round_up(M, tm)
    if Mp != M:
        a = jnp.pad(a, ((0, Mp - M), (0, 0)))
    c = bias.reshape(1, Np).astype(jnp.float32)

    # TODO(synk): pipeline_mode=pl.Buffered(3) on the A stream would help
    #             v5e's lower HBM bandwidth; left at default double-buffering.
    out = pl.pallas_call(
        functools.partial(_mm_bias_kernel, relu=relu),
        out_shape=jax.ShapeDtypeStruct((Mp, Np), out_dtype),
        grid_spec=pltpu.PrefetchScalarGridSpec(
            num_scalar_prefetch=0,
            grid=(Np // tn, Mp // tm),            # weights on the outer axis ->
            in_specs=[                            # resident across the M sweep
                pl.BlockSpec((tm, K), lambda j, i: (i, 0)),
                pl.BlockSpec((K, tn), lambda j, i: (0, j)),
                pl.BlockSpec((1, tn), lambda j, i: (0, j)),
            ],
            out_specs=pl.BlockSpec((tm, tn), lambda j, i: (i, j))),
        compiler_params=pltpu.CompilerParams(
            dimension_semantics=("parallel", "parallel"),
            vmem_limit_bytes=_VMEM_LIMIT),
    )(a, b, c)
    if Mp != M:
        out = out[:M]
    return out


# --------------------------------------------------------------------------
# im2col conv path (used only for the stride-2 convs: 7x7 stem, 3x3/s2 and
# the 1x1 downsample projections).
# TODO(synk): stride-2 convs still materialize an im2col patch matrix in HBM;
#             the flat shifted-window trick below only covers stride 1.
# --------------------------------------------------------------------------
def conv_im2col(x, wmat, kh, kw, bias, stride, padding, relu, o_real):
    N, H, W, C = x.shape
    K, _ = wmat.shape
    assert K == C * kh * kw
    xp = x
    if padding:
        xp = jnp.pad(x, ((0, 0), (padding, padding), (padding, padding),
                         (0, 0)))
    OH = (H + 2 * padding - kh) // stride + 1
    OW = (W + 2 * padding - kw) // stride + 1
    if kh == 1 and kw == 1:
        patches = xp[:, ::stride, ::stride, :][:, :OH, :OW, :]
        patches = patches.reshape(N * OH * OW, C)
    else:
        cols = [xp[:, i:i + stride * OH:stride, j:j + stride * OW:stride, :]
                for i in range(kh) for j in range(kw)]
        # (N,OH,OW,C,kh*kw) flatten -> K order (c,i,j): matches folded weights.
        patches = jnp.stack(cols, axis=4).reshape(N * OH * OW, C * kh * kw)
    out = matmul_bias_act(patches, wmat, bias, relu=relu)
    return out[:, :o_real].reshape(N, OH, OW, o_real)


# --------------------------------------------------------------------------
# Stride-1 3x3 conv without im2col: 9 statically shifted windows of the flat
# padded image, accumulated in f32 inside one Pallas call.  Bias, optional
# residual and ReLU are fused in the epilogue.
# --------------------------------------------------------------------------
def _conv3x3_kernel(a_ref, w_ref, b_ref, o_ref, *, wp, m_out, relu):
    acc = None
    for i in range(3):
        for j in range(3):
            a = a_ref[0, pl.ds(i * wp + j, m_out), :]
            p = jnp.dot(a, w_ref[i * 3 + j], preferred_element_type=jnp.float32)
            acc = p if acc is None else acc + p
    acc = acc + b_ref[...]
    if relu:
        acc = jnp.maximum(acc, 0.0)
    o_ref[0] = acc.astype(o_ref.dtype)


def _conv3x3_res_kernel(a_ref, w_ref, b_ref, r_ref, o_ref, *, wp, m_out, relu):
    acc = None
    for i in range(3):
        for j in range(3):
            a = a_ref[0, pl.ds(i * wp + j, m_out), :]
            p = jnp.dot(a, w_ref[i * 3 + j], preferred_element_type=jnp.float32)
            acc = p if acc is None else acc + p
    acc = acc + b_ref[...] + r_ref[0].astype(jnp.float32)
    if relu:
        acc = jnp.maximum(acc, 0.0)
    o_ref[0] = acc.astype(o_ref.dtype)


def nhwc_to_flatpad(x, o_pad):
    """(N,H,W,C) -> (N, H*(W+2), o_pad) padded-flat layout used by conv3x3_s1
    as the fused-residual layout (2 zero columns per row, zero-padded chans)."""
    N, H, W, C = x.shape
    xp = jnp.pad(x, ((0, 0), (0, 0), (0, 2), (0, o_pad - C)))
    return xp.reshape(N, H * (W + 2), o_pad)


def conv3x3_s1(x, w9, bias, relu=True, o_real=None, residual_flat=None):
    """3x3/s1/p1 conv, BN scale pre-folded into w9, fused bias/residual/ReLU.
    Returns (nhwc, flat) outputs; `flat` is reusable as a later residual."""
    N, H, W, C = x.shape
    taps, C2, Opad = w9.shape
    assert taps == 9 and C2 == C
    if o_real is None:
        o_real = Opad
    Wp = W + 2
    R = (H + 3) * Wp                   # 1 top + 2 bottom pad rows keep every
    m_out = H * Wp                     # shifted window read in bounds
    a = jnp.pad(x, ((0, 0), (1, 2), (1, 1), (0, 0))).reshape(N, R, C)
    bias2 = bias.reshape(1, Opad).astype(jnp.float32)

    tn = Opad if Opad <= 256 else 256
    grid = (Opad // tn, N)             # weights outer (stationary), batch inner

    in_specs = [
        pl.BlockSpec((1, R, C), lambda jn, n: (n, 0, 0)),
        pl.BlockSpec((9, C, tn), lambda jn, n: (0, 0, jn)),
        pl.BlockSpec((1, tn), lambda jn, n: (0, jn)),
    ]
    args = [a, w9, bias2]
    if residual_flat is None:
        kernel = functools.partial(_conv3x3_kernel, wp=Wp, m_out=m_out,
                                   relu=relu)
    else:
        in_specs.append(pl.BlockSpec((1, m_out, tn), lambda jn, n: (n, 0, jn)))
        args.append(residual_flat)
        kernel = functools.partial(_conv3x3_res_kernel, wp=Wp, m_out=m_out,
                                   relu=relu)

    flat = pl.pallas_call(
        kernel,
        out_shape=jax.ShapeDtypeStruct((N, m_out, Opad), _ACT_DTYPE),
        grid_spec=pltpu.PrefetchScalarGridSpec(
            num_scalar_prefetch=0,
            grid=grid,
            in_specs=in_specs,
            out_specs=pl.BlockSpec((1, m_out, tn), lambda jn, n: (n, 0, jn))),
        compiler_params=pltpu.CompilerParams(
            dimension_semantics=("parallel", "parallel"),
            vmem_limit_bytes=_VMEM_LIMIT),
    )(*args)
    out = flat.reshape(N, H, Wp, Opad)[:, :, :W, :o_real]
    return out, flat


# --------------------------------------------------------------------------
# Maxpool 3x3/s2/p1: separable.  Horizontal 3-tap max is a fused-in-XLA
# elementwise op (materializing shifted views at a kernel boundary would cost
# more HBM traffic); the vertical 3-tap max is a lane-dense Pallas kernel.
# --------------------------------------------------------------------------
def _max3_kernel(a_ref, b_ref, c_ref, o_ref):
    o_ref[...] = jnp.maximum(jnp.maximum(a_ref[...], b_ref[...]), c_ref[...])


def maxpool2d_nhwc(x, k=3, stride=2, padding=1):
    assert k == 3
    N, H, W, C = x.shape
    xp = jnp.pad(x, ((0, 0), (padding, padding), (padding, padding), (0, 0)),
                 constant_values=-jnp.inf)
    OH = (H + 2 * padding - k) // stride + 1
    OW = (W + 2 * padding - k) // stride + 1
    # horizontal pass (fused by XLA)
    h = xp[:, :, 0:stride * OW:stride, :]
    for j in range(1, k):
        h = jnp.maximum(h, xp[:, :, j:j + stride * OW:stride, :])
    # vertical pass: Pallas 3-way max over the three row-shifted strided views
    M = N * OH * OW
    views = [h[:, i:i + stride * OH:stride, :, :].reshape(M, C)
             for i in range(k)]
    rows, lanes = M, C
    if C < 128 and M % 2 == 0:
        rows, lanes = M // 2, 2 * C          # lane-dense stores
        views = [v.reshape(rows, lanes) for v in views]
    tm = _pick_tile(rows, 1024, 8, align=True)
    rp = _round_up(rows, tm)
    if rp != rows:
        views = [jnp.pad(v, ((0, rp - rows), (0, 0))) for v in views]

    out = pl.pallas_call(
        _max3_kernel,
        out_shape=jax.ShapeDtypeStruct((rp, lanes), x.dtype),
        grid_spec=pltpu.PrefetchScalarGridSpec(
            num_scalar_prefetch=0,
            grid=(rp // tm,),
            in_specs=[pl.BlockSpec((tm, lanes), lambda i: (i, 0))] * 3,
            out_specs=pl.BlockSpec((tm, lanes), lambda i: (i, 0))),
        compiler_params=pltpu.CompilerParams(
            dimension_semantics=("parallel",),
            vmem_limit_bytes=_VMEM_LIMIT),
    )(*views)
    return out[:rows].reshape(N, OH, OW, C)


# --------------------------------------------------------------------------
# ResNet18 forward
# --------------------------------------------------------------------------
def basic_block(x, x_flat, p, stride):
    o_real, o_pad = p["o_real"], p["o_pad"]
    # conv1 + bn1 + relu
    if stride == 1:
        out1, _ = conv3x3_s1(x, p["conv1_w9"], p["bn1_bias"], relu=True,
                             o_real=o_real)
    else:
        out1 = conv_im2col(x, p["conv1_wmat"], 3, 3, p["bn1_bias"],
                           stride, 1, relu=True, o_real=o_real)
    # identity / downsample path, already in the padded-flat residual layout
    if "down_wmat" in p:
        idn = conv_im2col(x, p["down_wmat"], 1, 1, p["down_bias"],
                          stride, 0, relu=False, o_real=o_real)
        res_flat = nhwc_to_flatpad(idn, o_pad)
    else:
        res_flat = x_flat if x_flat is not None else nhwc_to_flatpad(x, o_pad)
    # conv2 + bn2 + residual add + ReLU (all fused in the Pallas epilogue)
    out, out_flat = conv3x3_s1(out1, p["conv2_w9"], p["bn2_bias"], relu=True,
                               o_real=o_real, residual_flat=res_flat)
    return out, out_flat


def resnet18_forward(x_nchw, params):
    # NCHW (PyTorch) -> NHWC bf16 (kernel layout)
    x = jnp.transpose(x_nchw, (0, 2, 3, 1)).astype(_ACT_DTYPE)

    x = conv_im2col(x, params["conv1_wmat"], 7, 7, params["conv1_bias"],
                    stride=2, padding=3, relu=True, o_real=64)
    x = maxpool2d_nhwc(x, k=3, stride=2, padding=1)

    x_flat = None
    for layer_name in ("layer1", "layer2", "layer3", "layer4"):
        for blk_params, stride in params[layer_name]:
            x, x_flat = basic_block(x, x_flat, blk_params, stride)

    # global average pool + fc: tiny and memory-bound -> plain jnp
    pooled = jnp.mean(x.astype(jnp.float32), axis=(1, 2))       # (N, 512)
    logits = pooled @ params["fc_w"].astype(jnp.float32).T + params["fc_b"]
    return logits


# --------------------------------------------------------------------------
# Deterministic parameter initialization (shapes from the PyTorch module)
# --------------------------------------------------------------------------
class _KeyGen:
    def __init__(self, key):
        self.key = key

    def __call__(self):
        self.key, sub = jax.random.split(self.key)
        return sub


def make_resnet18_params(key, num_classes=2):
    kg = _KeyGen(key)
    eps = 1e-5

    def conv_w(o, c, kh, kw):
        std = (2.0 / (c * kh * kw)) ** 0.5
        return jax.random.normal(kg(), (o, c, kh, kw), jnp.float32) * std

    def bn_sb(c):
        gamma = 1.0 + 0.1 * jax.random.normal(kg(), (c,), jnp.float32)
        beta = 0.1 * jax.random.normal(kg(), (c,), jnp.float32)
        mean = 0.1 * jax.random.normal(kg(), (c,), jnp.float32)
        var = 1.0 + 0.1 * jax.random.uniform(kg(), (c,), jnp.float32)
        scale = gamma / jnp.sqrt(var + eps)
        bias = beta - mean * scale
        return scale, bias

    def block(cin, cout, stride):
        p = {"conv1_w": conv_w(cout, cin, 3, 3)}
        p["bn1_scale"], p["bn1_bias"] = bn_sb(cout)
        p["conv2_w"] = conv_w(cout, cout, 3, 3)
        p["bn2_scale"], p["bn2_bias"] = bn_sb(cout)
        if stride != 1 or cin != cout:
            p["down_conv_w"] = conv_w(cout, cin, 1, 1)
            p["down_bn_scale"], p["down_bn_bias"] = bn_sb(cout)
        return p, stride

    params = {"conv1_w": conv_w(64, 3, 7, 7)}
    params["bn1_scale"], params["bn1_bias"] = bn_sb(64)
    params["layer1"] = [block(64, 64, 1), block(64, 64, 1)]
    params["layer2"] = [block(64, 128, 2), block(128, 128, 1)]
    params["layer3"] = [block(128, 256, 2), block(256, 256, 1)]
    params["layer4"] = [block(256, 512, 2), block(512, 512, 1)]
    bound = 1.0 / (512 ** 0.5)
    params["fc_w"] = jax.random.uniform(kg(), (num_classes, 512), jnp.float32,
                                        -bound, bound)
    params["fc_b"] = jax.random.uniform(kg(), (num_classes,), jnp.float32,
                                        -bound, bound)
    return params


# --------------------------------------------------------------------------
# Parameter prep: fold BN scale into weights (in f32, then cast to bf16),
# pad output channels to a 128 multiple, build per-path weight layouts.
# --------------------------------------------------------------------------
def _fold_wmat(w, scale, o_pad):
    """(O,Cin,kh,kw) + BN scale -> (Cin*kh*kw, o_pad) bf16 matmul RHS."""
    o = w.shape[0]
    m = (w.reshape(o, -1) * scale[:, None]).T
    if o_pad != o:
        m = jnp.pad(m, ((0, 0), (0, o_pad - o)))
    return m.astype(_ACT_DTYPE)


def _fold_w9(w, scale, o_pad):
    """(O,Cin,3,3) + BN scale -> (9, Cin, o_pad) bf16, tap-major layout."""
    o, c = w.shape[0], w.shape[1]
    m = (w * scale[:, None, None, None]).transpose(2, 3, 1, 0).reshape(9, c, o)
    if o_pad != o:
        m = jnp.pad(m, ((0, 0), (0, 0), (0, o_pad - o)))
    return m.astype(_ACT_DTYPE)


def _pad_bias(b, o_pad):
    b = b.astype(jnp.float32)
    if o_pad != b.shape[0]:
        b = jnp.pad(b, (0, o_pad - b.shape[0]))
    return b


def prepare_resnet18_params(raw):
    p = {"conv1_wmat": _fold_wmat(raw["conv1_w"], raw["bn1_scale"], 128),
         "conv1_bias": _pad_bias(raw["bn1_bias"], 128),
         "fc_w": raw["fc_w"], "fc_b": raw["fc_b"]}
    for layer in ("layer1", "layer2", "layer3", "layer4"):
        blocks = []
        for bp, stride in raw[layer]:
            o = bp["conv1_w"].shape[0]
            o_pad = _round_up(o, 128)
            nb = {"o_real": o, "o_pad": o_pad,
                  "bn1_bias": _pad_bias(bp["bn1_bias"], o_pad),
                  "bn2_bias": _pad_bias(bp["bn2_bias"], o_pad),
                  "conv2_w9": _fold_w9(bp["conv2_w"], bp["bn2_scale"], o_pad)}
            if stride == 1:
                nb["conv1_w9"] = _fold_w9(bp["conv1_w"], bp["bn1_scale"], o_pad)
            else:
                nb["conv1_wmat"] = _fold_wmat(bp["conv1_w"], bp["bn1_scale"],
                                              o_pad)
            if "down_conv_w" in bp:
                nb["down_wmat"] = _fold_wmat(bp["down_conv_w"],
                                             bp["down_bn_scale"], o_pad)
                nb["down_bias"] = _pad_bias(bp["down_bn_bias"], o_pad)
            blocks.append((nb, stride))
        p[layer] = blocks
    return p


if __name__ == "__main__":
    root = jax.random.PRNGKey(0)
    kx, kp = jax.random.split(root)
    # PyTorch-style NCHW input: conv1 requires 3 input channels.
    x = jax.random.normal(kx, (2, 3, 16, 16), jnp.float32)
    raw_params = make_resnet18_params(kp, num_classes=2)
    params = prepare_resnet18_params(raw_params)

    logits = resnet18_forward(x, params)
    logits = jax.block_until_ready(logits)
    assert logits.shape == (2, 2)
    assert bool(jnp.all(jnp.isfinite(logits)))
    print("KERNEL_OK")
</pallas_src>

<mosaic_0001>
module attributes {stable_mosaic.version = 11 : i64} {
  func.func @_mm_bias_kernel(%arg0: i32, %arg1: i32, %arg2: memref<64x147xbf16, #tpu.memory_space<vmem>>, %arg3: memref<147x128xbf16, #tpu.memory_space<vmem>>, %arg4: memref<1x128xf32, #tpu.memory_space<vmem>>, %arg5: memref<64x128xbf16, #tpu.memory_space<vmem>>) attributes {dimension_semantics = [#tpu.dimension_semantics<parallel>, #tpu.dimension_semantics<parallel>], iteration_bounds = array<i64: 1, 2>, scalar_prefetch = 0 : i64, scratch_operands = 0 : i64, tpu.core_type = #tpu.core_type<tc>, window_params = [{transform_indices = @transform_0, window_bounds = array<i64: 64, 147>}, {transform_indices = @transform_1, window_bounds = array<i64: 147, 128>}, {transform_indices = @transform_2, window_bounds = array<i64: 1, 128>}, {transform_indices = @transform_3, window_bounds = array<i64: 64, 128>}]} {
    %c0 = arith.constant 0 : index
    %c0_0 = arith.constant 0 : index
    %0 = vector.load %arg2[%c0, %c0_0] : memref<64x147xbf16, #tpu.memory_space<vmem>>, vector<64x147xbf16>
    %c0_1 = arith.constant 0 : index
    %c0_2 = arith.constant 0 : index
    %1 = vector.load %arg3[%c0_1, %c0_2] : memref<147x128xbf16, #tpu.memory_space<vmem>>, vector<147x128xbf16>
    %cst = arith.constant dense<0.000000e+00> : vector<64x128xf32>
    %2 = tpu.matmul %0, %1, %cst {dimension_numbers = #tpu.dot_dimension_numbers<[1], [0], [0], [1], [0, 0, 1, 1], [], []>} : vector<64x147xbf16>, vector<147x128xbf16>, vector<64x128xf32> -> vector<64x128xf32>
    %c0_3 = arith.constant 0 : index
    %c0_4 = arith.constant 0 : index
    %3 = vector.load %arg4[%c0_3, %c0_4] : memref<1x128xf32, #tpu.memory_space<vmem>>, vector<1x128xf32>
    %4 = vector.broadcast %3 : vector<1x128xf32> to vector<64x128xf32>
    %5 = arith.addf %2, %4 : vector<64x128xf32>
    %cst_5 = arith.constant 0.000000e+00 : f32
    %6 = vector.broadcast %cst_5 : f32 to vector<64x128xf32>
    %7 = arith.maximumf %5, %6 : vector<64x128xf32>
    %8 = arith.truncf %7 : vector<64x128xf32> to vector<64x128xbf16>
    %c0_6 = arith.constant 0 : index
    %c0_7 = arith.constant 0 : index
    %9 = vector.load %arg5[%c0_6, %c0_7] : memref<64x128xbf16, #tpu.memory_space<vmem>>, vector<64x128xbf16>
    tpu.vector_store %arg5[%c0_6, %c0_7], %8 {strides = array<i32>} : memref<64x128xbf16, #tpu.memory_space<vmem>>, vector<64x128xbf16>,
    return
  }
  func.func @transform_0(%arg0: i32, %arg1: i32) -> (i32, i32) {
    %c0_i32 = arith.constant 0 : i32
    %c0_i32_0 = arith.constant 0 : i32
    return %arg1, %c0_i32 : i32, i32
  }
  func.func @transform_1(%arg0: i32, %arg1: i32) -> (i32, i32) {
    %c0_i32 = arith.constant 0 : i32
    %c0_i32_0 = arith.constant 0 : i32
    return %c0_i32, %arg0 : i32, i32
  }
  func.func @transform_2(%arg0: i32, %arg1: i32) -> (i32, i32) {
    %c0_i32 = arith.constant 0 : i32
    %c0_i32_0 = arith.constant 0 : i32
    return %c0_i32, %arg0 : i32, i32
  }
  func.func @transform_3(%arg0: i32, %arg1: i32) -> (i32, i32) {
    %c0_i32 = arith.constant 0 : i32
    return %arg1, %arg0 : i32, i32
  }
}

</mosaic_0001>

<bundles_post_ra>
// kernel: tpu_custom_call.1
= control target key start
LH: loop header
LB: loop body
LE: loop exit
PB: predicated region body
PF: predicated region fallthrough
CT: control target
= control target key end

     0   :  { %8 = vsyncpa [#allocation3], 0  ;;  %s1027_s0 = inlined_call_operand.vmem [shape: bf16[128,147], index: 0, kind: input, shape index: {}]   ;;  %s1028_s1 = inlined_call_operand.vmem [shape: bf16[147,128], index: 1, kind: input, shape index: {}]   ;;  %s1029_s2 = inlined_call_operand.vmem [shape: f32[1,128], index: 2, kind: input, shape index: {}]   ;;  %s1030_s3 = inlined_call_operand.hbm [shape: bf16[128,128], index: 3, kind: output, shape index: {}]  }
   0x1   :  { %10 = vsyncpa [#allocation3 + $0x1], 0  ;;  %s865_s12 = smov 0   ;;  %s867_s13 = smov 0  }
   0x2   :  { %s869_s14 = smov 0   ;;  %s871_s15 = smov 0  }
   0x3   :  { %s873_s16 = smov 0   ;;  %s875_s17 = smov 0  }
   0x4 LB: > { %s563_s18 = sadd.s32 4294967295, %s840_s17   ;;  %s564_s19 = sadd.s32 4294967294, %s840_s17   ;;  %s840_s17 = sphi %s875_s17, %s16_s17   ;;  %s836_s16 = sphi %s873_s16, %s1037_s16   ;;  %s832_s15 = sphi %s871_s15, %s1036_s15   ;;  %s828_s14 = sphi %s869_s14, %s1035_s14   ;;  %s824_s13 = sphi %s867_s13, %s1034_s13   ;;  %s820_s12 = sphi %s865_s12, %s1033_s12  }
   0x5   : > { %s25_s20 = sadd.s32 1, %s836_s16  ;;  %s115_s21 = sadd.s32 1, %s828_s14 }
   0x6   : > { %p26_p0 = scmp.ge.s32.totalorder %s25_s20, 2  ;;  %p125_p1 = scmp.ne.s32.totalorder %s828_s14, %s824_s13 }
   0x7   : > { %p126_p2 = scmp.eq.s32.totalorder %s563_s18, 1  ;;  %p131_p3 = scmp.ne.s32.totalorder %s824_s13, %s820_s12 }
   0x8   : > { %s1039_s20 = smov (%p26_p0, %s25_s20), 0  ;;  %p132_p5 = scmp.eq.s32.totalorder %s564_s19, 1 }
   0x9   : > { %p905_p4 = por %p126_p2, %p125_p1  ;;  %s110_s23 = ssub.s32 %s836_s16, %s1039_s20 }
   0xa   : > { %p569_p6 = scmp.ge.s32.totalorder %s840_s17, 1  ;;  %p113_p7 = scmp.eq.s32.totalorder %s110_s23, 0 }
   0xb   : > { %p912_p8 = por %p132_p5, %p131_p3  ;;  %p173_p9 = scmp.lt.s32.totalorder %s840_s17, 3 }
   0xc   : > { %s918_s25 = scalar_select %p113_p7, %s828_s14, %s115_s21  }
   0xd   : > { %p174_p10 = pnand %p569_p6, %p173_p9 }
   0xe   : > { %s571_s30 = sshll.u32 (!%p174_p10), %s832_s15, 3  ;;  %s202_s9 = sand.u32 (!%p174_p10), 1, %s824_s13  }
   0xf   : > { %177 = sbr.rel (%p174_p10) target bundleno = 220 (0xdc), region = 32  ;;  %p206_p11 = scmp.lt.s32.totalorder (!%p174_p10), %s571_s30, 15 }
  0x10   : > { %s570_s10 = sshll.u32 (!%p174_p10), %s202_s9, 5  ;;  %s669_s18 = sshll.u32 (!%p174_p10), %s832_s15, 5 }
  0x11   : > { %s982_s11 = scalar_lea.vmem (!%p174_p10), [#allocation2], %s570_s10  ;;  %s460_s23 = scalar_lea.hbm (!%p174_p10), %s1030_s3, %s669_s18 }
  0x12   : > { %s461_s26 = sshll.u32 (!%p174_p10), %s982_s11, 4  ;;  %s463_s27 = sshll.u32 (!%p174_p10), %s460_s23, 4  ;;  %s462_s26 = int_to_ptr.vmem [resolvable:$true] %s461_s26  ;;  %s464_s27 = int_to_ptr.hbm [resolvable:$true] %s463_s27 }
  0x13   : > { %s448_s15 = scalar_lea.sflag (!%p174_p10), [#allocation3], %s202_s9  ;;  %s776_s28 = sshra.s32 (!%p174_p10), %s464_s27, 4  ;;  %s777_s28 = int_to_ptr.hbm [resolvable:$true] %s776_s28 }
  0x14   : > { %v667_v0 = vld [vmem:[%s1028_s1 + $0x38] sm:$0xff]  ;;  %v247_v1 = vld [vmem:[%s1028_s1 + $0x48] sm:$0x3]  ;;  %vm358_vm0 = vcmask 1040384   ;;  %vm359_vm1 = vcmask 1041408   ;;  %v666_v3 = vld [vmem:[%s1028_s1 + $0x30] sm:$0xff]  ;;  %p783_p1 = scmp.lt.s32.totalorder %s777_s28, %s1030_s3 }
  0x15   : > { %v325_v2 = vunpack.c.l.b16 %v247_v1  ;;  %365 = vmatpush.bf16.msra.mxu0 %v667_v0  ;;  %693 = vmatpush.bf16.msra.mxu2 %v667_v0  ;;  %v842_v4 = vmov 65535   ;;  %s1041_s30 = smov (!%p206_p11, %s571_s30), 15  ;;  %v665_v9 = vld [vmem:[%s1028_s1 + $0x28] sm:$0xff]  ;;  %v668_v10 = vld [vmem:[%s1028_s1 + $0x40] sm:$0xff]  ;;  %vm345_vm2 = vcmask 154624   ;;  %v663_v18 = vld [vmem:[%s1028_s1 + $0x18] sm:$0xff] }
  0x16   : > { %v360_v5 = vsel %vm358_vm0, 4294967295, %v842_v4  ;;  %s651_s8 = sshll.u32 %s1041_s30, 3  ;;  %v664_v14 = vld [vmem:[%s1028_s1 + $0x20] sm:$0xff]  ;;  %v662_v19 = vld [vmem:[%s1028_s1 + $0x10] sm:$0xff]  ;;  %v661_v20 = vld [vmem:[%s1028_s1 + $0x8] sm:$0xff]  ;;  %s778_s29 = scalar_lea.hbm %s777_s28, 32 }
  0x17   : > { %v335_v6 = vpack.c.b16 %v325_v2, %v325_v2  ;;  %v361_v7 = vsel %vm359_vm1, %v360_v5, 0  ;;  %s939_s19 = scalar_lea.vmem %s1027_s0, %s651_s8  ;;  %v660_v24 = vld [vmem:[%s1028_s1] sm:$0xff]  ;;  %p779_p12 = scmp.ne.s32.totalorder %s777_s28, %s778_s29 }
  0x18   : > { %v654_v11 = vld [vmem:[%s939_s19 + $0x14] sm:$0xf]  ;;  %v586_v12 = vld [vmem:[%s939_s19 + $0x18] sm:$0xf0]  ;;  %v652_v15 = vld [vmem:[%s939_s19 + $0x4] sm:$0xf] }
  0x19   : > { %v363_v8 = vand.u32 %v361_v7, %v335_v6  ;;  %366 = vmatpush.bf16.msra.mxu0 %v666_v3  ;;  %694 = vmatpush.bf16.msra.mxu2 %v666_v3  ;;  %v589_v13 = vor.u32 %v654_v11, %v586_v12  ;;  %v578_v16 = vld [vmem:[%s939_s19 + $0x8] sm:$0xf0]  ;;  %v656_v21 = vld [vmem:[%s939_s19 + $0x24] sm:$0xf]  ;;  %v576_v25 = vld [vmem:[%s939_s19] sm:$0xf]  ;;  %p780_p13 = pnand %p779_p12, %p905_p4 }
  0x1a   : > { %v581_v17 = vor.u32 %v652_v15, %v578_v16  ;;  %v594_v22 = vld [vmem:[%s939_s19 + $0x28] sm:$0xf0]  ;;  %v653_v26 = vld [vmem:[%s939_s19 + $0x4] sm:$0xf0]  ;;  %v592_v27 = vld [vmem:[%s939_s19 + $0x20] sm:$0xf] }
  0x1b   : > { %701 = vmatpush.bf16.msra.mxu3 %v363_v8  ;;  %400 = vmatpush.bf16.msra.mxu1 %v363_v8  ;;  %v597_v23 = vor.u32 %v656_v21, %v594_v22  ;;  %v657_v28 = vld [vmem:[%s939_s19 + $0x24] sm:$0xf0]  ;;  %v577_v29 = vor.u32 %v653_v26, %v576_v25  ;;  %v658_v31 = vld [vmem:[%s939_s19 + $0x34] sm:$0xf]  ;;  %v602_v32 = vld [vmem:[%s939_s19 + $0x38] sm:$0xf0]  ;;  %p781_p0 = pneg %p780_p13 }
  0x1c   : > { %v593_v30 = vor.u32 %v657_v28, %v592_v27  ;;  %v605_v33 = vor.u32 %v658_v31, %v602_v32  ;;  %v584_v34 = vld [vmem:[%s939_s19 + $0x10] sm:$0xf]  ;;  %v655_v35 = vld [vmem:[%s939_s19 + $0x14] sm:$0xf0]  ;;  %v761_v44 = vld [vmem:[%s1029_s2] ss:$0 sm:$0xff] }
  0x1d   : > { %367 = vmatpush.bf16.msra.mxu0 %v665_v9  ;;  %695 = vmatpush.bf16.msra.mxu2 %v665_v9  ;;  %v600_v36 = vld [vmem:[%s939_s19 + $0x30] sm:$0xf]  ;;  %v659_v37 = vld [vmem:[%s939_s19 + $0x34] sm:$0xf0]  ;;  %v585_v38 = vor.u32 %v655_v35, %v584_v34  ;;  %s782_s5 = scalar_lea.hbm %s1030_s3, 64 }
  0x1e   : > { %v601_v39 = vor.u32 %v659_v37, %v600_v36  ;;  %p784_p2 = scmp.lt.s32.totalorder %s782_s5, %s778_s29 }
  0x1f   : > { %702 = vmatpush.bf16.msra.mxu3 %v668_v10  ;;  %401 = vmatpush.bf16.msra.mxu1 %v668_v10 }
  0x20   : > { %p785_p3 = por %p784_p2, %p783_p1 }
  0x21   : > { %368 = vmatpush.bf16.msra.mxu0 %v664_v14  ;;  %696 = vmatpush.bf16.msra.mxu2 %v664_v14 }
  0x22   : > { %643 = vmatmul.msk.bf16.vlgmr.msra.gmra.mxu3 %vm345_vm2, %v589_v13  ;;  %642 = vmatmul.msk.bf16.vlgmr.msra.gmra.mxu1 %vm345_vm2, %v581_v17  ;;  %p786_p5 = pnand %p785_p3, %p781_p0 }
  0x25   : > { %369 = vmatpush.bf16.msra.mxu0 %v663_v18  ;;  %697 = vmatpush.bf16.msra.mxu2 %v663_v18 }
  0x29   : > { %370 = vmatpush.bf16.msra.mxu0 %v662_v19  ;;  %698 = vmatpush.bf16.msra.mxu2 %v662_v19 }
  0x2d   : > { %371 = vmatpush.bf16.msra.mxu0 %v661_v20  ;;  %699 = vmatpush.bf16.msra.mxu2 %v661_v20 }
  0x31   : > { %372 = vmatpush.bf16.msra.mxu0 %v660_v24  ;;  %700 = vmatpush.bf16.msra.mxu2 %v660_v24 }
  0x32   : > { %644 = vmatmul.msk.bf16.gmra.mxu3 %vm345_vm2, %v597_v23 }
  0x34   : > { %373 = vmatmul.bf16.vlgmr.msra.gmra.mxu0 %v577_v29  ;;  %383 = vmatmul.bf16.vlgmr.msra.gmra.mxu2 %v593_v30 }
  0x42   : > { %645 = vmatmul.msk.bf16.gmra.mxu3 %vm345_vm2, %v605_v33 }
  0x44   : > { %378 = vmatmul.bf16.gmra.mxu0 %v585_v38  ;;  %388 = vmatmul.bf16.gmra.mxu2 %v601_v39 }
  0x9f   : > { %v403_v42 = vpop.f32.mrf.mxu1 }
  0xa5   : > { %v408_v40 = vpop.f32.mrf.mxu3 }
  0xa7   : > { %v405_v49 = vpop.f32.mrf.mxu1 }
  0xad   : > { %v410_v41 = vpop.f32.mrf.mxu3 }
  0xb1   : > { %v374_v43 = vpop.f32.mrf.mxu0 }
  0xb2   : > { %v375_v46 = vadd.f32 %v761_v44, %v374_v43 }
  0xb4   : > { %v404_v50 = vadd.f32 %v403_v42, %v375_v46 }
  0xb5   : > { %v413_v45 = vpop.f32.mrf.mxu3 }
  0xb6   : > { %v423_v54 = vmax.f32 %v404_v50, 0.0 }
  0xb7   : > { %v384_v47 = vpop.f32.mrf.mxu2 }
  0xb8   : > { %v385_v53 = vadd.f32 %v761_v44, %v384_v47 }
  0xb9   : > { %v376_v48 = vpop.f32.mrf.mxu0 }
  0xba   : > { %v377_v51 = vadd.f32 %v761_v44, %v376_v48  ;;  %v414_v59 = vadd.f32 %v413_v45, %v385_v53 }
  0xbc   : > { %v406_v52 = vadd.f32 %v405_v49, %v377_v51  ;;  %v427_v63 = vmax.f32 %v414_v59, 0.0 }
  0xbd   : > { %v415_v56 = vpop.f32.mrf.mxu3 }
  0xbe   : > { %v424_v55 = vmax.f32 %v406_v52, 0.0 }
  0xbf   : > { %v386_v58 = vpop.f32.mrf.mxu2 }
  0xc0   : > { %v673_v57 = vpack.c.bf16 %v424_v55, %v423_v54  ;;  %v387_v60 = vadd.f32 %v761_v44, %v386_v58 }
  0xc1   : > { %v379_v61 = vpop.f32.mrf.mxu0 }
  0xc2   : > { %674 = vst [vmem:[%s982_s11] sm:$0xff] %v673_v57   ;;  %v416_v62 = vadd.f32 %v415_v56, %v387_v60  ;;  %v380_v1 = vadd.f32 %v761_v44, %v379_v61 }
  0xc4   : > { %v428_v0 = vmax.f32 %v416_v62, 0.0  ;;  %v409_v6 = vadd.f32 %v408_v40, %v380_v1 }
  0xc5   : > { %v418_v3 = vpop.f32.mrf.mxu3 }
  0xc6   : > { %v683_v2 = vpack.c.bf16 %v428_v0, %v427_v63  ;;  %v425_v10 = vmax.f32 %v409_v6, 0.0 }
  0xc7   : > { %v389_v4 = vpop.f32.mrf.mxu2 }
  0xc8   : > { %691 = vst [vmem:[%s982_s11 + $0x10] sm:$0xff] %v683_v2   ;;  %v390_v9 = vadd.f32 %v761_v44, %v389_v4 }
  0xc9   : > { %v381_v5 = vpop.f32.mrf.mxu0 }
  0xca   : > { %v382_v7 = vadd.f32 %v761_v44, %v381_v5  ;;  %v419_v14 = vadd.f32 %v418_v3, %v390_v9 }
  0xcc   : > { %v411_v8 = vadd.f32 %v410_v41, %v382_v7  ;;  %v429_v18 = vmax.f32 %v419_v14, 0.0 }
  0xcd   : > { %v420_v16 = vpop.f32.mrf.mxu3 }
  0xce   : > { %v426_v11 = vmax.f32 %v411_v8, 0.0 }
  0xcf   : > { %v391_v13 = vpop.f32.mrf.mxu2 }
  0xd0   : > { %v678_v12 = vpack.c.bf16 %v426_v11, %v425_v10  ;;  %v392_v15 = vadd.f32 %v761_v44, %v391_v13 }
  0xd2   : > { %690 = vst [vmem:[%s982_s11 + $0x8] sm:$0xff] %v678_v12   ;;  %v421_v17 = vadd.f32 %v420_v16, %v392_v15 }
  0xd4   : > { %v430_v19 = vmax.f32 %v421_v17, 0.0 }
  0xd6   : > { %v688_v20 = vpack.c.bf16 %v430_v19, %v429_v18 }
  0xd8   : > { %692 = vst [vmem:[%s982_s11 + $0x18] sm:$0xff] %v688_v20  }
  0xd9   : > { %789 = shalt.err (!%p786_p5)
}
  0xda   : > { %s843_s8 = smov 64   ;;  %s844_s9 = smov 4  }
  0xdb   : > { %703 = dma.vmem_to_hbm [thread:$0]  (%p905_p4), %s462_s26, 512, %s464_s27, %s448_s15, %s843_s8, %s843_s8, %s844_s9  }
  0xdc PF: > { %p709_p6 = scmp.ge.s32.totalorder %s840_s17, 2  ;;  %s478_s10 = sand.u32 1, %s820_s12  }
  0xdd   : > { %s479_s11 = scalar_lea.sflag [#allocation3], %s478_s10 }
  0xde   : > { %p706_p7 = pnand %p709_p6, %p912_p8 }
  0xe0   : > { %p707_p9 = pneg %p706_p7 }
  0xe2   : > { %815 = dma.done.wait (%p707_p9), %s479_s11, 512  }
  0xe3   : > { %817 = vsyncadd (%p707_p9), %s479_s11, 4294966784  ;;  %s16_s17 = sadd.s32 1, %s840_s17   ;;  %s1033_s12 = smov %s824_s13 }
  0xe4   : > { %p13_p10 = scmp.ge.s32.totalorder %s16_s17, 4   ;;  %s1034_s13 = smov %s828_s14 }
  0xe5   : > { %s1035_s14 = smov %s918_s25  ;;  %s1036_s15 = smov %s836_s16 }
  0xe6   : > { %s1037_s16 = smov %s1039_s20  ;;  %15 = sbr.rel (!%p13_p10) target bundleno = 4 (0x4), region = 73 }
  0xeb   :  { %485 = vsyncpa [#allocation3], 1 }
  0xec   :  { %487 = vsyncpa [#allocation3 + $0x1], 1 }

</bundles_post_ra>
